<compile_context>
chip_gen: v7x
topology: tpu7x:2x2x1
jax: 0.10.0
libtpu: 0.0.40
codegen_flags: <defaults>
</compile_context>

<pallas_src>
import jax
import jax.numpy as jnp
from jax.experimental import pallas as pl
from jax.experimental.pallas import tpu as pltpu


def _round_up(x, m):
    return ((x + m - 1) // m) * m


def _sample_kernel(z_ref, w_ref, mean_ref, out_ref):
    # z_ref:    (tile_n, k)       f32   standard-normal block (streamed over N)
    # w_ref:    (k, tile_d)       bf16  sqrt(eigenvalues)-scaled eigenvectors.T
    # mean_ref: (1, tile_d)       f32   mean vector block
    # out_ref:  (tile_n, tile_d)        generated samples
    z = z_ref[...].astype(jnp.bfloat16)                    # in-kernel cast (VPU, free)
    proj = jnp.dot(z, w_ref[...],
                   preferred_element_type=jnp.float32)     # MXU, f32 accumulate
    out_ref[...] = (proj + mean_ref[...]).astype(out_ref.dtype)


def _pick_tile_d(d):
    # Stream w over d in 512-lane blocks when d is large so its VMEM footprint
    # stays flat (v7x has only 64 MiB); otherwise use the full extent, which the
    # (8,128) block rule allows even when d % 128 != 0 (masked stores on that dim).
    return 512 if d > 1024 else d


def _pick_tile_n(n, k, tile_d,
                 target_out_bytes=4 << 20,      # ~4 MiB of output per grid step
                 vmem_budget_bytes=36 << 20):   # headroom inside v7x's 64 MiB VMEM
    """Rows per grid step, sized by bytes/step rather than a fixed row cap."""
    # Charge the (double-buffered) w / mean blocks against the budget first.
    w_bytes = 2 * (k * tile_d * 2) + 2 * (tile_d * 4)
    budget = max(vmem_budget_bytes - w_bytes, 4 << 20)
    per_row = 2 * (k * 4) + 2 * (tile_d * 4)    # dbl-buffered f32 z row + out row
    tile = min(target_out_bytes // (4 * tile_d), budget // per_row)
    # Keep >= 2 row-blocks so the "parallel" axis can split across v7x's 2 TCs.
    tile = min(tile, _round_up(pl.cdiv(n, 2), 8))
    # MXU-height-friendly rounding (256-wide MXU on v6e/v7x), else sublane (8).
    if tile >= 256:
        tile = (tile // 256) * 256
    else:
        tile = max(8, (tile // 8) * 8)
    return int(min(tile, _round_up(n, 8)))


def component_gaussian_sample(z, mean, eigenvectors, eigenvalues, *,
                              tile_n=None, out_dtype=jnp.float32):
    """z: (N, k); mean: (d,); eigenvectors: (d, k); eigenvalues: (k,) -> (N, d)."""
    n, k = z.shape
    d = mean.shape[0]

    # Fold sqrt(eigenvalues) into the projection matrix once (O(k*d), not O(N)).
    # Negative eigenvalues propagate NaN via sqrt, matching the PyTorch reference.
    w = (jnp.sqrt(eigenvalues.astype(jnp.float32))[:, None]
         * eigenvectors.astype(jnp.float32).T).astype(jnp.bfloat16)      # (k, d)
    mean_2d = mean.astype(jnp.float32).reshape(1, d)

    tile_d = _pick_tile_d(d)
    if tile_n is None:
        tile_n = _pick_tile_n(n, k, tile_d)
    else:
        tile_n = min(max(8, (int(tile_n) // 8) * 8), _round_up(n, 8))

    n_blocks = pl.cdiv(n, tile_n)       # ragged final row-block -> masked stores
    d_blocks = pl.cdiv(d, tile_d)
    out_bytes = jnp.dtype(out_dtype).itemsize

    # Actual VMEM footprint (pipeline double-buffers every operand).
    footprint = (2 * tile_n * k * 4                 # z blocks (f32)
                 + 2 * tile_n * tile_d * out_bytes  # out blocks
                 + 2 * k * tile_d * 2               # w blocks (bf16)
                 + 2 * tile_d * 4)                  # mean blocks
    vmem_limit = int(min(max(footprint * 5 // 4 + (4 << 20), 16 << 20), 56 << 20))

    out = pl.pallas_call(
        _sample_kernel,
        out_shape=jax.ShapeDtypeStruct((n, d), out_dtype),
        grid=(n_blocks, d_blocks),
        in_specs=[
            pl.BlockSpec((tile_n, k), lambda i, j: (i, 0)),   # z: streamed over N
            pl.BlockSpec((k, tile_d), lambda i, j: (0, j)),   # w: streamed over d
            pl.BlockSpec((1, tile_d), lambda i, j: (0, j)),   # mean: per d-block
        ],
        out_specs=pl.BlockSpec((tile_n, tile_d), lambda i, j: (i, j)),
        compiler_params=pltpu.CompilerParams(
            dimension_semantics=("parallel", "arbitrary"),    # row-blocks split on v7x
            vmem_limit_bytes=vmem_limit),
        cost_estimate=pl.CostEstimate(
            flops=2 * n * k * d,
            transcendentals=0,
            bytes_accessed=(4 * n * k                  # z read once (f32)
                            + 2 * k * d * n_blocks     # w re-read per row-block
                            + 4 * d * n_blocks
                            + out_bytes * n * d)),     # dominant output write
    )(z.astype(jnp.float32), w, mean_2d)
    return out


if __name__ == "__main__":
    # Deterministic parameter init mirroring ComponentGaussian.__init__:
    #   mean = randn(d); eigenvectors = QR(randn(d,d))[:, :k]; eigenvalues = |randn(k)|
    d = 32
    k = 32            # component_count defaults to dimensionality
    num_samples = 40  # not a multiple of tile_n -> exercises the ragged final block

    key = jax.random.PRNGKey(0)
    k_mean, k_mat, k_eval, k_z = jax.random.split(key, 4)

    mean = jax.random.normal(k_mean, (d,), dtype=jnp.float32)
    random_matrix = jax.random.normal(k_mat, (d, d), dtype=jnp.float32)
    q, _ = jnp.linalg.qr(random_matrix)              # glue: parameter setup in plain JAX
    eigenvectors = q[:, :k]
    eigenvalues = jnp.abs(jax.random.normal(k_eval, (k,), dtype=jnp.float32))

    # The stochastic draw z ~ N(0, I) (torch.randn inside sample()) is an input.
    z = jax.random.normal(k_z, (num_samples, k), dtype=jnp.float32)

    # Pure-JAX f32 reference; tolerance accounts for bf16 MXU operands (f32 accumulate).
    ref = (z * jnp.sqrt(eigenvalues)[None, :]) @ eigenvectors.T + mean

    # Explicit small tile -> grid (3, 1) with a masked (ragged) final row-block.
    out = component_gaussian_sample(z, mean, eigenvectors, eigenvalues, tile_n=16)
    out = jax.block_until_ready(out)
    assert out.shape == (num_samples, d)
    assert out.dtype == jnp.float32
    assert jnp.allclose(out, ref, atol=5e-2, rtol=5e-2), float(jnp.max(jnp.abs(out - ref)))

    # Auto (byte-budgeted) tile-size path should agree as well.
    out_auto = jax.block_until_ready(
        component_gaussian_sample(z, mean, eigenvectors, eigenvalues))
    assert jnp.allclose(out_auto, ref, atol=5e-2, rtol=5e-2)

    print("KERNEL_OK")
</pallas_src>

<mosaic_0001>
module attributes {stable_mosaic.version = 11 : i64} {
  func.func @_sample_kernel(%arg0: i32, %arg1: i32, %arg2: memref<16x32xf32, #tpu.memory_space<vmem>>, %arg3: memref<32x32xbf16, #tpu.memory_space<vmem>>, %arg4: memref<1x32xf32, #tpu.memory_space<vmem>>, %arg5: memref<16x32xf32, #tpu.memory_space<vmem>>) attributes {dimension_semantics = [#tpu.dimension_semantics<parallel>, #tpu.dimension_semantics<arbitrary>], iteration_bounds = array<i64: 3, 1>, scalar_prefetch = 0 : i64, scratch_operands = 0 : i64, tpu.core_type = #tpu.core_type<tc>, window_params = [{transform_indices = @transform_0, window_bounds = array<i64: 16, 32>}, {transform_indices = @transform_1, window_bounds = array<i64: 32, 32>}, {transform_indices = @transform_2, window_bounds = array<i64: 1, 32>}, {transform_indices = @transform_3, window_bounds = array<i64: 16, 32>}]} {
    %c0 = arith.constant 0 : index
    %c0_0 = arith.constant 0 : index
    %0 = vector.load %arg2[%c0, %c0_0] : memref<16x32xf32, #tpu.memory_space<vmem>>, vector<16x32xf32>
    %1 = arith.truncf %0 : vector<16x32xf32> to vector<16x32xbf16>
    %c0_1 = arith.constant 0 : index
    %c0_2 = arith.constant 0 : index
    %2 = vector.load %arg3[%c0_1, %c0_2] : memref<32x32xbf16, #tpu.memory_space<vmem>>, vector<32x32xbf16>
    %cst = arith.constant dense<0.000000e+00> : vector<16x32xf32>
    %3 = tpu.matmul %1, %2, %cst {dimension_numbers = #tpu.dot_dimension_numbers<[1], [0], [0], [1], [0, 0, 1, 1], [], []>} : vector<16x32xbf16>, vector<32x32xbf16>, vector<16x32xf32> -> vector<16x32xf32>
    %c0_3 = arith.constant 0 : index
    %c0_4 = arith.constant 0 : index
    %4 = vector.load %arg4[%c0_3, %c0_4] : memref<1x32xf32, #tpu.memory_space<vmem>>, vector<1x32xf32>
    %5 = vector.broadcast %4 : vector<1x32xf32> to vector<16x32xf32>
    %6 = arith.addf %3, %5 : vector<16x32xf32>
    %c0_5 = arith.constant 0 : index
    %c0_6 = arith.constant 0 : index
    %7 = vector.load %arg5[%c0_5, %c0_6] : memref<16x32xf32, #tpu.memory_space<vmem>>, vector<16x32xf32>
    tpu.vector_store %arg5[%c0_5, %c0_6], %6 {strides = array<i32>} : memref<16x32xf32, #tpu.memory_space<vmem>>, vector<16x32xf32>,
    return
  }
  func.func @transform_0(%arg0: i32, %arg1: i32) -> (i32, i32) {
    %c0_i32 = arith.constant 0 : i32
    %c0_i32_0 = arith.constant 0 : i32
    return %arg0, %c0_i32 : i32, i32
  }
  func.func @transform_1(%arg0: i32, %arg1: i32) -> (i32, i32) {
    %c0_i32 = arith.constant 0 : i32
    %c0_i32_0 = arith.constant 0 : i32
    return %c0_i32, %arg1 : i32, i32
  }
  func.func @transform_2(%arg0: i32, %arg1: i32) -> (i32, i32) {
    %c0_i32 = arith.constant 0 : i32
    %c0_i32_0 = arith.constant 0 : i32
    return %c0_i32, %arg1 : i32, i32
  }
  func.func @transform_3(%arg0: i32, %arg1: i32) -> (i32, i32) {
    %c0_i32 = arith.constant 0 : i32
    return %arg0, %arg1 : i32, i32
  }
}

</mosaic_0001>

<bundles_post_ra>
// kernel: tpu_custom_call.1
= control target key start
LH: loop header
LB: loop body
LE: loop exit
PB: predicated region body
PF: predicated region fallthrough
CT: control target
= control target key end

     0   :  { %s847_s12 = smov 0   ;;  %s849_s13 = smov 0   ;;  %s958_s0 = inlined_call_operand.vmem [shape: f32[40,32], index: 0, kind: input, shape index: {}]   ;;  %s959_s1 = inlined_call_operand.vmem [shape: bf16[32,32], index: 1, kind: input, shape index: {}]   ;;  %s960_s2 = inlined_call_operand.vmem [shape: f32[1,32], index: 2, kind: input, shape index: {}]   ;;  %s961_s3 = inlined_call_operand.vmem [shape: f32[40,32], index: 3, kind: output, shape index: {}]  }
   0x1   :  { %s851_s14 = smov 0   ;;  %s853_s15 = smov 0  }
   0x2   :  { %s855_s16 = smov 0  }
   0x3 LB: > { %s568_s17 = sadd.s32 4294967295, %s791_s16   ;;  %s25_s18 = sadd.s32 1, %s787_s15  ;;  %s791_s16 = sphi %s855_s16, %s13_s16   ;;  %s787_s15 = sphi %s853_s15, %s966_s15   ;;  %s783_s14 = sphi %s851_s14, %s965_s14   ;;  %s779_s13 = sphi %s849_s13, %s964_s13   ;;  %s775_s12 = sphi %s847_s12, %s963_s12  }
   0x4   : > { %p27_p0 = scmp.ge.s32.totalorder %s25_s18, 3  ;;  %s112_s19 = sadd.s32 1, %s779_s13 }
   0x5   : > { %p122_p1 = scmp.ne.s32.totalorder %s779_s13, %s775_s12  ;;  %p123_p2 = scmp.eq.s32.totalorder %s568_s17, 2 }
   0x6   : > { %s968_s18 = smov (%p27_p0, %s25_s18), 0  ;;  %p574_p4 = scmp.ge.s32.totalorder %s791_s16, 1 }
   0x7   : > { %p879_p3 = por %p123_p2, %p122_p1  ;;  %s107_s21 = ssub.s32 %s787_s15, %s968_s18 }
   0x8   : > { %p177_p5 = scmp.lt.s32.totalorder %s791_s16, 4  ;;  %p110_p6 = scmp.eq.s32.totalorder %s107_s21, 0 }
   0xa   : > { %p178_p7 = pnand %p574_p4, %p177_p5 }
   0xb   : > { %s888_s22 = scalar_select %p110_p6, %s779_s13, %s112_s19  }
   0xc   : > { %181 = sbr.rel (%p178_p7) target bundleno = 292 (0x124), region = 32  ;;  %v719_v0 = vld [vmem:[%s959_s1] sm:$0xff] (!%p178_p7)   ;;  %v825_v1 = vmov (!%p178_p7), 0.0   ;;  %v720_v2 = vld [vmem:[%s959_s1 + $0x8] sm:$0xff] (!%p178_p7)   ;;  %vm826_vm0 = vmmov (!%p178_p7), 0   ;;  %s897_s27 = sshll.u32 (!%p178_p7), %s783_s14, 1 }
   0xd   : > { %605 = vmatprep.subr.bf16.mxu0 (!%p178_p7), %v825_v1  ;;  %609 = vmatprep.mubr.msk.bf16.mxu0 (!%p178_p7), %vm826_vm0, %v825_v1  ;;  %p216_p8 = scmp.lt.s32.totalorder (!%p178_p7), %s897_s27, 4  ;;  %vm264_vm1 = vcmask (!%p178_p7), 261120   ;;  %s208_s6 = sand.u32 (!%p178_p7), 1, %s775_s12   ;;  %v578_v6 = vld [vmem:[%s960_s2] ss:$0 sm:$0xff] (!%p178_p7) }
   0xe   : > { %606 = vmatpush3.bf16.msra.mxu0 (!%p178_p7), %v719_v0  ;;  %s575_s7 = sshll.u32 (!%p178_p7), %s208_s6, 4 }
   0xf   : > { %607 = vmatprep.subr.bf16.mxu0 (!%p178_p7), %v825_v1  ;;  %s908_s10 = scalar_lea.vmem (!%p178_p7), [#allocation2], %s575_s7  }
  0x12   : > { %608 = vmatpush3.bf16.msra.mxu0 (!%p178_p7), %v720_v2 }
  0x13   : > { %s217_s28 = scalar_select %p216_p8, %s897_s27, 4 }
  0x14   : > { %s319_s11 = ssub.s32 (%p879_p3), 5, %s897_s27  ;;  %s599_s12 = sshll.u32 (%p879_p3), %s783_s14, 4 }
  0x15   : > { %s577_s29 = sshll.u32 %s217_s28, 3  ;;  %p320_p9 = scmp.lt.s32.totalorder (%p879_p3), %s319_s11, 2 }
  0x16   : > { %s219_s5 = scalar_lea.vmem %s958_s0, %s577_s29  ;;  %s919_s21 = scalar_lea.vmem (%p879_p3), %s961_s3, %s599_s12  }
  0x17   : > { %v238_v3 = vld [vmem:[%s219_s5] sm:$0xff]  ;;  %v239_v4 = vld [vmem:[%s219_s5 + $0x8] sm:$0xff] }
  0x18   : > { %v240_v5 = vpack.c.bf16 %v239_v4, %v238_v3 }
  0x1a   : > { %610 = vmatmul.mubr.msk.bf16.vlgmr.msra.gmra.mrb[0].mxu0 %vm264_vm1, %v240_v5 }
  0xec   : > { %317 = sbr.rel (!%p879_p3) target bundleno = 292 (0x124), region = 36 }
  0xed   : > { %v302_v7 = vpop.f32.mrb[0].mxu0 }
  0xee   : > { %v303_v8 = vadd.f32 %v578_v6, %v302_v7  ;;  %v611_v9 = vpop.f32.mrb[1].mxu0 }
  0xef   : > { %v305_v10 = vpop.f32.mrb[2].mxu0 }
  0xf0   : > { %309 = vst.msk [vmem:[%s908_s10] sm:$0xff] %vm264_vm1, %v303_v8  ;;  %v306_v11 = vadd.f32 %v578_v6, %v305_v10  ;;  %v612_v12 = vpop.f32.mrb[3].mxu0 }
  0xf2   : > { %310 = vst.msk [vmem:[%s908_s10 + $0x8] sm:$0xff] %vm264_vm1, %v306_v11 }
  0xf3   : > { %s970_s11 = smov (!%p320_p9, %s319_s11), 2 }
  0xf4   : > { %s584_s23 = sshll.u32 %s970_s11, 7 }
  0xf5   : > { %p587_p10 = scmp.eq.s32.totalorder %s584_s23, 0 }
  0xf6   : > { %s925_s24 = sshrl.u32 (!%p587_p10), %s970_s11, 1 }
  0xf7   : > { %329 = sbr.rel (%p587_p10) target bundleno = 292 (0x124), region = 40  ;;  %p588_p11 = scmp.le.s32.totalorder (!%p587_p10), %s925_s24, 0 }
  0xfe   : > { %498 = sbr.rel (%p588_p11) target bundleno = 271 (0x10f), region = 122  ;;  %s793_s14 = smov (!%p588_p11), %s919_s21  }
  0xff   : > { %s797_s20 = smov (!%p588_p11), %s908_s10   ;;  %s801_s25 = smov (!%p588_p11), 0  }
 0x100   : > { %s805_s26 = smov (!%p588_p11), 0  }
 0x105 LB: >> { %v393_v13 = vld [vmem:[%s799_s20] sm:$0xff]  ;;  %v395_v14 = vld [vmem:[%s799_s20 + $0x8] sm:$0xff]  ;;  %s397_s27 = sadd.s32 1, %s803_s25  ;;  %s387_s26 = sadd.s32 1, %s807_s26   ;;  %s807_s26 = sphi %s805_s26, %s387_s26   ;;  %s803_s25 = sphi %s801_s25, %s802_s25   ;;  %s799_s20 = sphi %s797_s20, %s402_s20   ;;  %s795_s14 = sphi %s793_s14, %s403_s14  }
 0x106   : >> { %394 = vst [vmem:[%s795_s14] sm:$0xff] %v393_v13  ;;  %396 = vst [vmem:[%s795_s14 + $0x8] sm:$0xff] %v395_v14  ;;  %p398_p12 = scmp.ge.s32.totalorder %s397_s27, %s925_s24  ;;  %p386_p13 = scmp.ge.s32.totalorder %s387_s26, %s925_s24 }
 0x108   : >> { %s972_s27 = smov (%p398_p12, %s397_s27), 0  ;;  %389 = sbr.rel (!%p386_p13) target bundleno = 261 (0x105), region = 128 }
 0x109   : >> { %s589_s28 = sshll.u32 %s972_s27, 4  ;;  %s802_s25 = smov %s972_s27  }
 0x10a   : >> { %s402_s20 = scalar_lea.vmem %s908_s10, %s589_s28 [#allocation2]   ;;  %s403_s14 = scalar_lea.vmem %s919_s21, %s589_s28  }
 0x10f PF: > { %s935_s29 = sand.u32 1, %s970_s11   ;;  %s600_s30 = sshll.u32 %s925_s24, 4 }
 0x110   : > { %s408_s4 = scalar_lea.vmem %s908_s10, %s600_s30 [#allocation2]   ;;  %s410_s5 = scalar_lea.vmem %s919_s21, %s600_s30  }
 0x111   : > { %p594_p0 = scmp.le.s32.totalorder %s935_s29, 0 }
 0x112   : > { %s809_s6 = smov (!%p594_p0), %s410_s5   ;;  %s813_s7 = smov (!%p594_p0), %s408_s4  }
 0x113   : > { %512 = sbr.rel (%p594_p0) target bundleno = 292 (0x124), region = 133  ;;  %s817_s8 = smov (!%p594_p0), 0  }
 0x114   : > { %s821_s9 = smov (!%p594_p0), 0  }
 0x11a LB: >> { %v420_v15 = vld [vmem:[%s815_s7] sm:$0xff]  ;;  %s422_s11 = sadd.s32 1, %s819_s8  ;;  %s414_s9 = sadd.s32 1, %s823_s9   ;;  %s823_s9 = sphi %s821_s9, %s414_s9   ;;  %s819_s8 = sphi %s817_s8, %s818_s8   ;;  %s815_s7 = sphi %s813_s7, %s427_s7   ;;  %s811_s6 = sphi %s809_s6, %s428_s6  }
 0x11b   : >> { %421 = vst [vmem:[%s811_s6] sm:$0xff] %v420_v15  ;;  %p423_p1 = scmp.ge.s32.totalorder %s422_s11, %s935_s29  ;;  %p413_p2 = scmp.ge.s32.totalorder %s414_s9, %s935_s29 }
 0x11d   : >> { %s974_s11 = smov (%p423_p1, %s422_s11), 0  ;;  %416 = sbr.rel (!%p413_p2) target bundleno = 282 (0x11a), region = 139 }
 0x11e   : >> { %s595_s10 = sshll.u32 %s974_s11, 3  ;;  %s818_s8 = smov %s974_s11  }
 0x11f   : >> { %s427_s7 = scalar_lea.vmem %s408_s4, %s595_s10 [#allocation2]   ;;  %s428_s6 = scalar_lea.vmem %s410_s5, %s595_s10  }
 0x124 PF: > { %s13_s16 = sadd.s32 1, %s791_s16   ;;  %s963_s12 = smov %s779_s13 }
 0x125   : > { %p10_p3 = scmp.ge.s32.totalorder %s13_s16, 5   ;;  %s964_s13 = smov %s888_s22 }
 0x126   : > { %s965_s14 = smov %s787_s15  ;;  %s966_s15 = smov %s968_s18 }
 0x127   :  { %12 = sbr.rel (!%p10_p3) target bundleno = 3 (0x3), region = 150 }

</bundles_post_ra>
